<compile_context>
chip_gen: v7x
topology: tpu7x:2x2x1
jax: 0.10.0
libtpu: 0.0.40
codegen_flags: <defaults>
</compile_context>

<pallas_src>
import functools

import jax
import jax.numpy as jnp
from jax.experimental import pallas as pl
from jax.experimental.pallas import tpu as pltpu

LANES = 128        # lane width
BR_MAX = 4096      # max sublane rows per grid step (2 MiB f32 per input tile)
CHUNK_ROWS = 128   # rows per inner fori_loop slice (64 KiB f32 per operand)


def _round_up(x, m):
    return (x + m - 1) // m * m


def _num_tensorcores():
    """2 TensorCores per chip on v7x, 1 on v5e/v6e (safe fallback: 1)."""
    try:
        kind = jax.devices()[0].device_kind.lower()
    except Exception:
        return 1
    return 2 if "v7" in kind else 1


def _partial_sums_kernel(br, chunk, blocks_per_part, rows_valid, need_mask,
                         p_ref, t_ref, abs_ref, sq_ref, gt_ref):
    """Accumulate per-part partial sums of |d|, d^2 and (d>0) into (8,128) slabs."""
    s = pl.program_id(1)

    @pl.when(s == 0)
    def _():
        abs_ref[...] = jnp.zeros_like(abs_ref)
        sq_ref[...] = jnp.zeros_like(sq_ref)
        gt_ref[...] = jnp.zeros_like(gt_ref)

    part = pl.program_id(0)
    blk = part * blocks_per_part + s
    row0 = blk * br                       # first global row of this tile
    n_chunks = br // chunk
    unroll = min(8, n_chunks)

    def accumulate(apply_mask):
        def body(c, carry):
            a_acc, s_acc, g_acc = carry
            off = pl.multiple_of(c * chunk, chunk)
            pv = p_ref[pl.ds(off, chunk), :].astype(jnp.float32)
            tv = t_ref[pl.ds(off, chunk), :].astype(jnp.float32)
            d = pv - tv
            if apply_mask:
                # Mask rows past the true row count (ragged tail of the last
                # real block, and fully-duplicated clamped blocks).  Must be
                # applied to d BEFORE ad/sq/gt are formed.
                row = (row0 + off
                       + jax.lax.broadcasted_iota(jnp.int32, (chunk, LANES), 0))
                d = jnp.where(row < rows_valid, d, 0.0)
            ad = jnp.abs(d)
            sq = d * d
            gt = (d > 0.0).astype(jnp.float32)
            # Fold the (chunk,128) slice into (8,128) vreg slabs: VALU adds only.
            groups = chunk // 8
            a_acc = a_acc + ad.reshape(groups, 8, LANES).sum(axis=0)
            s_acc = s_acc + sq.reshape(groups, 8, LANES).sum(axis=0)
            g_acc = g_acc + gt.reshape(groups, 8, LANES).sum(axis=0)
            return a_acc, s_acc, g_acc

        zero = jnp.zeros((8, LANES), jnp.float32)
        init = (zero, zero, zero)
        if n_chunks == 1:
            a_acc, s_acc, g_acc = body(0, init)
        else:
            a_acc, s_acc, g_acc = jax.lax.fori_loop(
                0, n_chunks, body, init, unroll=unroll)

        abs_ref[0] = abs_ref[0] + a_acc
        sq_ref[0] = sq_ref[0] + s_acc
        gt_ref[0] = gt_ref[0] + g_acc

    if need_mask:
        # Only the block(s) reaching past rows_valid pay the iota/compare/select.
        block_is_clean = (blk + 1) * br <= rows_valid

        @pl.when(block_is_clean)
        def _():
            accumulate(False)

        @pl.when(jnp.logical_not(block_is_clean))
        def _():
            accumulate(True)
    else:
        accumulate(False)


def weighted_asymmetric_mae_mse_loss(predictions, targets):
    assert predictions.shape == targets.shape
    n = int(predictions.size)

    p = predictions.reshape(-1)
    t = targets.reshape(-1)

    # Only pad the sub-row remainder (< 128 elems) with zeros; a zero diff
    # contributes 0 to every partial sum.  When n % 128 == 0 there is no
    # host-side copy beyond the free reshape.
    pad = (-n) % LANES
    if pad:
        p = jnp.pad(p, (0, pad))
        t = jnp.pad(t, (0, pad))
    rows = (n + pad) // LANES
    p2 = p.reshape(rows, LANES)
    t2 = t.reshape(rows, LANES)

    # Dtype-aware sublane packing: 8 rows for f32, 16 for bf16, 32 for int8.
    itemsize = min(p2.dtype.itemsize, t2.dtype.itemsize)
    pack = 32 // itemsize

    # Tile sizing: as large as BR_MAX but never (much) taller than the array,
    # and always an exact multiple of the inner chunk size.
    br_target = min(BR_MAX, _round_up(rows, pack))
    if br_target > CHUNK_ROWS:
        br = _round_up(br_target, CHUNK_ROWS)
        chunk = CHUNK_ROWS
    else:
        br = br_target
        chunk = br

    num_blocks = -(-rows // br)                       # cdiv
    num_parts = min(_num_tensorcores(), num_blocks)   # 2 only on v7x
    blocks_per_part = -(-num_blocks // num_parts)     # cdiv
    need_mask = (rows % br != 0) or (num_parts * blocks_per_part != num_blocks)
    last_block = num_blocks - 1

    def in_map(part, s):
        # Clamp so duplicated tail steps of the last part re-read a valid
        # block (their contribution is fully masked out in-kernel).
        return (jnp.minimum(part * blocks_per_part + s, last_block), 0)

    def out_map(part, s):
        return (part, 0, 0)

    kernel = functools.partial(
        _partial_sums_kernel, br, chunk, blocks_per_part, rows, need_mask)

    # VMEM budget: 2 inputs x 2 pipeline buffers x tile, plus headroom for
    # in-kernel temporaries (chunk-sized) and the tiny output slabs.
    tile_bytes = br * LANES * (p2.dtype.itemsize + t2.dtype.itemsize)
    vmem_limit = int(min(2 * tile_bytes + (8 << 20), 64 << 20))
    bytes_in = n * (p2.dtype.itemsize + t2.dtype.itemsize)

    part_shape = jax.ShapeDtypeStruct((num_parts, 8, LANES), jnp.float32)
    abs_p, sq_p, gt_p = pl.pallas_call(
        kernel,
        out_shape=(part_shape, part_shape, part_shape),
        grid=(num_parts, blocks_per_part),
        in_specs=[
            pl.BlockSpec((br, LANES), in_map),
            pl.BlockSpec((br, LANES), in_map),
        ],
        out_specs=(
            pl.BlockSpec((1, 8, LANES), out_map),
            pl.BlockSpec((1, 8, LANES), out_map),
            pl.BlockSpec((1, 8, LANES), out_map),
        ),
        compiler_params=pltpu.CompilerParams(
            dimension_semantics=("parallel", "arbitrary"),
            vmem_limit_bytes=vmem_limit),
        cost_estimate=pl.CostEstimate(
            flops=6 * n, transcendentals=0, bytes_accessed=bytes_in),
    )(p2, t2)

    # Tiny final combine outside the kernel (a few KB of data).
    inv_n = jnp.float32(1.0 / n)
    mae = abs_p.sum() * inv_n
    mse = sq_p.sum() * inv_n
    frac = gt_p.sum() * inv_n
    return frac * mae + (1.0 - frac) * (2.0 * mse)


def _reference(predictions, targets):
    p = predictions.astype(jnp.float32)
    t = targets.astype(jnp.float32)
    mae = jnp.mean(jnp.abs(p - t))
    mse = jnp.mean((p - t) ** 2)
    loss = jnp.where(p > t, mae, mse * 2.0)
    return jnp.mean(loss)


if __name__ == "__main__":
    key = jax.random.PRNGKey(0)
    kp, kt = jax.random.split(key)
    predictions = jax.random.normal(kp, (2, 4, 16, 16), dtype=jnp.float32)
    targets = jax.random.normal(kt, (2, 4, 16, 16), dtype=jnp.float32)

    loss_fn = jax.jit(weighted_asymmetric_mae_mse_loss)
    result = jax.block_until_ready(loss_fn(predictions, targets))

    expected = _reference(predictions, targets)
    assert jnp.allclose(result, expected, rtol=1e-5, atol=1e-6), (result, expected)
    print("KERNEL_OK")
</pallas_src>

<mosaic_0001>
module attributes {stable_mosaic.version = 11 : i64} {
  func.func @_partial_sums_kernel(%arg0: i32, %arg1: i32, %arg2: memref<16x128xf32, #tpu.memory_space<vmem>>, %arg3: memref<16x128xf32, #tpu.memory_space<vmem>>, %arg4: memref<1x8x128xf32, #tpu.memory_space<vmem>>, %arg5: memref<1x8x128xf32, #tpu.memory_space<vmem>>, %arg6: memref<1x8x128xf32, #tpu.memory_space<vmem>>) attributes {dimension_semantics = [#tpu.dimension_semantics<parallel>, #tpu.dimension_semantics<arbitrary>], iteration_bounds = array<i64: 1, 1>, scalar_prefetch = 0 : i64, scratch_operands = 0 : i64, tpu.core_type = #tpu.core_type<tc>, window_params = [{transform_indices = @transform_0, window_bounds = array<i64: 16, 128>}, {transform_indices = @transform_1, window_bounds = array<i64: 16, 128>}, {transform_indices = @transform_2, window_bounds = array<i64: 1, 8, 128>}, {transform_indices = @transform_3, window_bounds = array<i64: 1, 8, 128>}, {transform_indices = @transform_4, window_bounds = array<i64: 1, 8, 128>}]} {
    %c0_i32 = arith.constant 0 : i32
    %0 = arith.cmpi eq, %arg1, %c0_i32 : i32
    %1 = arith.extui %0 : i1 to i32
    %c0_i32_0 = arith.constant 0 : i32
    %2 = arith.cmpi ne, %1, %c0_i32_0 : i32
    scf.if %2 {
      %cst_25 = arith.constant 0.000000e+00 : f32
      %43 = vector.broadcast %cst_25 : f32 to vector<1x8x128xf32>
      %c0_26 = arith.constant 0 : index
      %c0_27 = arith.constant 0 : index
      %c0_28 = arith.constant 0 : index
      %44 = vector.load %arg4[%c0_26, %c0_27, %c0_28] : memref<1x8x128xf32, #tpu.memory_space<vmem>>, vector<1x8x128xf32>
      tpu.vector_store %arg4[%c0_26, %c0_27, %c0_28], %43 {strides = array<i32>} : memref<1x8x128xf32, #tpu.memory_space<vmem>>, vector<1x8x128xf32>,
      %cst_29 = arith.constant 0.000000e+00 : f32
      %45 = vector.broadcast %cst_29 : f32 to vector<1x8x128xf32>
      %c0_30 = arith.constant 0 : index
      %c0_31 = arith.constant 0 : index
      %c0_32 = arith.constant 0 : index
      %46 = vector.load %arg5[%c0_30, %c0_31, %c0_32] : memref<1x8x128xf32, #tpu.memory_space<vmem>>, vector<1x8x128xf32>
      tpu.vector_store %arg5[%c0_30, %c0_31, %c0_32], %45 {strides = array<i32>} : memref<1x8x128xf32, #tpu.memory_space<vmem>>, vector<1x8x128xf32>,
      %cst_33 = arith.constant 0.000000e+00 : f32
      %47 = vector.broadcast %cst_33 : f32 to vector<1x8x128xf32>
      %c0_34 = arith.constant 0 : index
      %c0_35 = arith.constant 0 : index
      %c0_36 = arith.constant 0 : index
      %48 = vector.load %arg6[%c0_34, %c0_35, %c0_36] : memref<1x8x128xf32, #tpu.memory_space<vmem>>, vector<1x8x128xf32>
      tpu.vector_store %arg6[%c0_34, %c0_35, %c0_36], %47 {strides = array<i32>} : memref<1x8x128xf32, #tpu.memory_space<vmem>>, vector<1x8x128xf32>,
    } else {
    }
    %cst = arith.constant 0.000000e+00 : f32
    %3 = vector.broadcast %cst : f32 to vector<8x128xf32>
    %c0_i32_1 = arith.constant 0 : i32
    %4 = tpu.assume_multiple %c0_i32_1, 16 : i32
    %5 = arith.index_cast %4 : i32 to index
    %c0 = arith.constant 0 : index
    %6 = vector.load %arg2[%5, %c0] : memref<16x128xf32, #tpu.memory_space<vmem>>, vector<16x128xf32>
    %7 = arith.index_cast %4 : i32 to index
    %c0_2 = arith.constant 0 : index
    %8 = vector.load %arg3[%7, %c0_2] : memref<16x128xf32, #tpu.memory_space<vmem>>, vector<16x128xf32>
    %9 = arith.subf %6, %8 : vector<16x128xf32>
    %10 = math.absf %9 : vector<16x128xf32>
    %11 = arith.mulf %9, %9 : vector<16x128xf32>
    %cst_3 = arith.constant 0.000000e+00 : f32
    %12 = vector.broadcast %cst_3 : f32 to vector<16x128xf32>
    %13 = arith.cmpf ogt, %9, %12 : vector<16x128xf32>
    %14 = arith.extui %13 : vector<16x128xi1> to vector<16x128xi32>
    %15 = arith.sitofp %14 : vector<16x128xi32> to vector<16x128xf32>
    %16 = vector.shape_cast %10 : vector<16x128xf32> to vector<2x8x128xf32>
    %cst_4 = arith.constant dense<0.000000e+00> : vector<8x128xf32>
    %17 = vector.multi_reduction <add>, %16, %cst_4 [0] : vector<2x8x128xf32> to vector<8x128xf32>
    %18 = arith.addf %3, %17 : vector<8x128xf32>
    %19 = vector.shape_cast %11 : vector<16x128xf32> to vector<2x8x128xf32>
    %cst_5 = arith.constant dense<0.000000e+00> : vector<8x128xf32>
    %20 = vector.multi_reduction <add>, %19, %cst_5 [0] : vector<2x8x128xf32> to vector<8x128xf32>
    %21 = arith.addf %3, %20 : vector<8x128xf32>
    %22 = vector.shape_cast %15 : vector<16x128xf32> to vector<2x8x128xf32>
    %cst_6 = arith.constant dense<0.000000e+00> : vector<8x128xf32>
    %23 = vector.multi_reduction <add>, %22, %cst_6 [0] : vector<2x8x128xf32> to vector<8x128xf32>
    %24 = arith.addf %3, %23 : vector<8x128xf32>
    %c0_7 = arith.constant 0 : index
    %c0_8 = arith.constant 0 : index
    %c0_9 = arith.constant 0 : index
    %25 = vector.load %arg4[%c0_7, %c0_8, %c0_9] : memref<1x8x128xf32, #tpu.memory_space<vmem>>, vector<1x8x128xf32>
    %26 = vector.shape_cast %25 : vector<1x8x128xf32> to vector<8x128xf32>
    %27 = arith.addf %26, %18 : vector<8x128xf32>
    %c0_10 = arith.constant 0 : index
    %c0_11 = arith.constant 0 : index
    %c0_12 = arith.constant 0 : index
    %28 = vector.load %arg4[%c0_10, %c0_11, %c0_12] : memref<1x8x128xf32, #tpu.memory_space<vmem>>, vector<1x8x128xf32>
    %29 = vector.shape_cast %28 : vector<1x8x128xf32> to vector<8x128xf32>
    %30 = vector.shape_cast %27 : vector<8x128xf32> to vector<1x8x128xf32>
    tpu.vector_store %arg4[%c0_10, %c0_11, %c0_12], %30 {strides = array<i32>} : memref<1x8x128xf32, #tpu.memory_space<vmem>>, vector<1x8x128xf32>,
    %c0_13 = arith.constant 0 : index
    %c0_14 = arith.constant 0 : index
    %c0_15 = arith.constant 0 : index
    %31 = vector.load %arg5[%c0_13, %c0_14, %c0_15] : memref<1x8x128xf32, #tpu.memory_space<vmem>>, vector<1x8x128xf32>
    %32 = vector.shape_cast %31 : vector<1x8x128xf32> to vector<8x128xf32>
    %33 = arith.addf %32, %21 : vector<8x128xf32>
    %c0_16 = arith.constant 0 : index
    %c0_17 = arith.constant 0 : index
    %c0_18 = arith.constant 0 : index
    %34 = vector.load %arg5[%c0_16, %c0_17, %c0_18] : memref<1x8x128xf32, #tpu.memory_space<vmem>>, vector<1x8x128xf32>
    %35 = vector.shape_cast %34 : vector<1x8x128xf32> to vector<8x128xf32>
    %36 = vector.shape_cast %33 : vector<8x128xf32> to vector<1x8x128xf32>
    tpu.vector_store %arg5[%c0_16, %c0_17, %c0_18], %36 {strides = array<i32>} : memref<1x8x128xf32, #tpu.memory_space<vmem>>, vector<1x8x128xf32>,
    %c0_19 = arith.constant 0 : index
    %c0_20 = arith.constant 0 : index
    %c0_21 = arith.constant 0 : index
    %37 = vector.load %arg6[%c0_19, %c0_20, %c0_21] : memref<1x8x128xf32, #tpu.memory_space<vmem>>, vector<1x8x128xf32>
    %38 = vector.shape_cast %37 : vector<1x8x128xf32> to vector<8x128xf32>
    %39 = arith.addf %38, %24 : vector<8x128xf32>
    %c0_22 = arith.constant 0 : index
    %c0_23 = arith.constant 0 : index
    %c0_24 = arith.constant 0 : index
    %40 = vector.load %arg6[%c0_22, %c0_23, %c0_24] : memref<1x8x128xf32, #tpu.memory_space<vmem>>, vector<1x8x128xf32>
    %41 = vector.shape_cast %40 : vector<1x8x128xf32> to vector<8x128xf32>
    %42 = vector.shape_cast %39 : vector<8x128xf32> to vector<1x8x128xf32>
    tpu.vector_store %arg6[%c0_22, %c0_23, %c0_24], %42 {strides = array<i32>} : memref<1x8x128xf32, #tpu.memory_space<vmem>>, vector<1x8x128xf32>,
    return
  }
  func.func @transform_0(%arg0: i32, %arg1: i32) -> (i32, i32) {
    %c1_i32 = arith.constant 1 : i32
    %0 = arith.muli %arg0, %c1_i32 : i32
    %1 = arith.addi %0, %arg1 : i32
    %c0_i32 = arith.constant 0 : i32
    %2 = arith.minsi %1, %c0_i32 : i32
    %c0_i32_0 = arith.constant 0 : i32
    %c0_i32_1 = arith.constant 0 : i32
    return %2, %c0_i32_0 : i32, i32
  }
  func.func @transform_1(%arg0: i32, %arg1: i32) -> (i32, i32) {
    %c1_i32 = arith.constant 1 : i32
    %0 = arith.muli %arg0, %c1_i32 : i32
    %1 = arith.addi %0, %arg1 : i32
    %c0_i32 = arith.constant 0 : i32
    %2 = arith.minsi %1, %c0_i32 : i32
    %c0_i32_0 = arith.constant 0 : i32
    %c0_i32_1 = arith.constant 0 : i32
    return %2, %c0_i32_0 : i32, i32
  }
  func.func @transform_2(%arg0: i32, %arg1: i32) -> (i32, i32, i32) {
    %c0_i32 = arith.constant 0 : i32
    %c0_i32_0 = arith.constant 0 : i32
    %c0_i32_1 = arith.constant 0 : i32
    return %arg0, %c0_i32, %c0_i32_0 : i32, i32, i32
  }
  func.func @transform_3(%arg0: i32, %arg1: i32) -> (i32, i32, i32) {
    %c0_i32 = arith.constant 0 : i32
    %c0_i32_0 = arith.constant 0 : i32
    %c0_i32_1 = arith.constant 0 : i32
    return %arg0, %c0_i32, %c0_i32_0 : i32, i32, i32
  }
  func.func @transform_4(%arg0: i32, %arg1: i32) -> (i32, i32, i32) {
    %c0_i32 = arith.constant 0 : i32
    %c0_i32_0 = arith.constant 0 : i32
    %c0_i32_1 = arith.constant 0 : i32
    return %arg0, %c0_i32, %c0_i32_0 : i32, i32, i32
  }
}

</mosaic_0001>

<bundles_post_ra>
// kernel: weighted_asymmetric_mae_mse_loss.1
= control target key start
LH: loop header
LB: loop body
LE: loop exit
PB: predicated region body
PF: predicated region fallthrough
CT: control target
= control target key end

     0   :  { %v143_v10 = vmov 0.0   ;;  %s190_s0 = inlined_call_operand.vmem [shape: f32[16,128], index: 0, kind: input, shape index: {}]   ;;  %s191_s1 = inlined_call_operand.vmem [shape: f32[16,128], index: 1, kind: input, shape index: {}]   ;;  %s192_s2 = inlined_call_operand.vmem [shape: f32[1,8,128], index: 2, kind: output, shape index: {0}]   ;;  %s193_s3 = inlined_call_operand.vmem [shape: f32[1,8,128], index: 3, kind: output, shape index: {1}]   ;;  %s194_s4 = inlined_call_operand.vmem [shape: f32[1,8,128], index: 4, kind: output, shape index: {2}]  }
   0x1   :  { %v85_v0 = vld [vmem:[%s190_s0] sm:$0xff]  ;;  %v86_v1 = vld [vmem:[%s190_s0 + $0x8] sm:$0xff] }
   0x2   :  { %v87_v2 = vld [vmem:[%s191_s1] sm:$0xff]  ;;  %v88_v3 = vld [vmem:[%s191_s1 + $0x8] sm:$0xff] }
   0x3   :  { %v89_v4 = vsub.f32 %v85_v0, %v87_v2  ;;  %v90_v5 = vsub.f32 %v86_v1, %v88_v3 }
   0x5   :  { %v91_v6 = vand.u32 2147483647, %v89_v4  ;;  %v93_v7 = vmul.f32 %v89_v4, %v89_v4  ;;  %vm95_vm0 = vcmp.gt.f32.partialorder %v89_v4, 0.0  ;;  %v92_v8 = vand.u32 2147483647, %v90_v5 }
   0x6   :  { %v94_v9 = vmul.f32 %v90_v5, %v90_v5  ;;  %vm96_vm1 = vcmp.gt.f32.partialorder %v90_v5, 0.0  ;;  %v140_v11 = vsel %vm95_vm0, 1.0, %v143_v10 }
   0x7   :  { %v141_v12 = vsel %vm96_vm1, 1.0, %v143_v10  ;;  %v101_v13 = vadd.f32 %v92_v8, %v91_v6 }
   0x8   :  { %v103_v14 = vadd.f32 %v94_v9, %v93_v7  ;;  %v105_v15 = vadd.f32 %v141_v12, %v140_v11 }
   0x9   :  { %109 = vst [vmem:[%s192_s2] sm:$0xff] %v101_v13 }
   0xa   :  { %112 = vst [vmem:[%s193_s3] sm:$0xff] %v103_v14  ;;  %115 = vst [vmem:[%s194_s4] sm:$0xff] %v105_v15 }

</bundles_post_ra>
